<compile_context>
chip_gen: v7x
topology: tpu7x:2x2x1
jax: 0.10.0
libtpu: 0.0.40
codegen_flags: <defaults>
</compile_context>

<pallas_src>
import functools

import jax
import jax.numpy as jnp
from jax import lax
from jax.experimental import pallas as pl
from jax.experimental.pallas import tpu as pltpu


def _round_up(x, m):
    return ((x + m - 1) // m) * m


def _chip_profile():
    """Return (vmem_capacity_bytes, small_vmem). small_vmem ~ v7x-class (64 MiB/TC, 2 TCs)."""
    vmem_cap = None
    try:
        vmem_cap = int(pltpu.get_tpu_info().vmem_capacity_bytes)
    except Exception:
        vmem_cap = None
    if vmem_cap is None:
        try:
            kind = jax.devices()[0].device_kind.lower()
        except Exception:
            kind = ""
        vmem_cap = (64 << 20) if "7" in kind else (128 << 20)
    return vmem_cap, vmem_cap < (100 << 20)


def _fit_tile(full_dim, pref, granule, bytes_per_unit, budget_bytes):
    """Largest granule-aligned tile <= pref whose pipelined bytes fit the budget.

    Halving from a power-of-two preference keeps granule alignment; if the whole
    dimension fits, use the full dim (a full-dim block is always legal).
    """
    t = max(granule, (pref // granule) * granule)
    while t > granule and t * bytes_per_unit > budget_bytes:
        t //= 2
    if full_dim <= t:
        return full_dim
    return max(granule, (t // granule) * granule)


def _projection_kernel(x_ref, w_ref, b_ref, o_ref, *, negative_slope, cast_bf16):
    # x_ref : (tile_b, K)       VMEM   activations (full K, no padding)
    # w_ref : (n_blk, K)        VMEM   weight rows (resident or per-N-tile; NOT transposed)
    # b_ref : (1, n_blk)        VMEM   bias slab
    # o_ref : (tile_b, n_blk)   VMEM
    x = x_ref[...]
    w = w_ref[...]
    if cast_bf16:
        x = x.astype(jnp.bfloat16)
        w = w.astype(jnp.bfloat16)
    # Contract x's K (last dim) against w's K (last dim): (tile_b, K) x (n_blk, K) -> (tile_b, n_blk).
    # MXU matmul with f32 accumulation; no materialized W^T.
    # TODO(synk): verify with pl.lower_as_mlir that this transposed-RHS contraction does not emit a
    # per-tile vxpose on v6e/v7x; if it does, present the RHS as (K, n_blk) once outside the hot loop.
    y = lax.dot_general(
        x, w,
        dimension_numbers=(((1,), (1,)), ((), ())),
        preferred_element_type=jnp.float32,
    )
    y = y + b_ref[...].astype(jnp.float32)
    # LeakyReLU(slope<1): max(y, slope*y) == where(y>=0, y, slope*y)
    y = jnp.maximum(y, negative_slope * y)
    o_ref[...] = y.astype(o_ref.dtype)


def projection_forward(x, weight, bias, *, tile_b=None, tile_n=None, compute_in_bf16=False):
    """x: (B, latent_dim); weight: (hidden_dim, latent_dim); bias: (hidden_dim,)."""
    B, K = x.shape
    N, Kw = weight.shape
    assert Kw == K and bias.shape == (N,)

    itemsize = jnp.dtype(x.dtype).itemsize
    b2 = bias.reshape(1, N)

    # ---- Per-generation VMEM / tile policy. ----
    _, small_vmem = _chip_profile()
    if small_vmem:                       # v7x-class: 64 MiB VMEM per TC, 2 TCs
        block_budget = 4 << 20
        pref_tile = 512
        vmem_cap = 48 << 20
    else:                                # v5e / v6e: 128 MiB VMEM
        block_budget = 8 << 20
        pref_tile = 1024
        vmem_cap = 96 << 20

    user_tile_b = tile_b
    weight_resident = (N * K * itemsize) <= (8 << 20)

    cost = pl.CostEstimate(
        flops=2 * B * K * N,
        transcendentals=0,
        bytes_accessed=itemsize * (B * K + N * K + N + B * N),
    )
    kernel = functools.partial(
        _projection_kernel, negative_slope=0.2, cast_bf16=compute_in_bf16)

    if weight_resident:
        # ---- Path A: whole weight + bias stay resident in VMEM; 1-D grid over batch tiles. ----
        if tile_b is None:
            row_bytes = 2 * itemsize * (K + N)          # double-buffered x row + out row
            tile_b = _fit_tile(B, pref_tile, 8, row_bytes, block_budget)
            # v7x has 2 TensorCores sharded over the "parallel" axis: avoid a 1-step grid.
            if small_vmem and tile_b >= B and B >= 16:
                tile_b = _round_up((B + 1) // 2, 8)
        else:
            tile_b = min(tile_b, B)
            if tile_b < B:
                tile_b = max(8, (tile_b // 8) * 8)

        grid = (pl.cdiv(B, tile_b),)
        in_specs = [
            pl.BlockSpec((tile_b, K), lambda i: (i, 0)),   # x batch tile, full K
            pl.BlockSpec((N, K), lambda i: (0, 0)),        # weight: resident, DMAed once
            pl.BlockSpec((1, N), lambda i: (0, 0)),        # bias:   resident
        ]
        out_specs = pl.BlockSpec((tile_b, N), lambda i: (i, 0))
        dims = ("parallel",)
        footprint = 2 * itemsize * (tile_b * K + tile_b * N + N * K + N)
    else:
        # ---- Path B: weight too big to hold — stream it on the OUTER axis so each weight tile
        #      is held across the inner batch loop (no per-step re-DMA of W). ----
        if tile_n is None:
            tile_n = _fit_tile(N, pref_tile, 128, 2 * itemsize * K, block_budget)
        else:
            tile_n = min(tile_n, N)
            if tile_n < N:
                tile_n = max(128, (tile_n // 128) * 128)
        if tile_b is None:
            tile_b = _fit_tile(B, pref_tile, 8, 2 * itemsize * (K + tile_n), block_budget)
        else:
            tile_b = min(tile_b, B)
            if tile_b < B:
                tile_b = max(8, (tile_b // 8) * 8)

        grid = (pl.cdiv(N, tile_n), pl.cdiv(B, tile_b))    # (outer=N tiles, inner=B tiles)
        in_specs = [
            pl.BlockSpec((tile_b, K), lambda j, i: (i, 0)),     # x tile re-streamed (small)
            pl.BlockSpec((tile_n, K), lambda j, i: (j, 0)),     # W tile: outer-axis only -> held
            pl.BlockSpec((1, tile_n), lambda j, i: (0, j)),     # bias slab: changes only per outer step
        ]
        out_specs = pl.BlockSpec((tile_b, tile_n), lambda j, i: (i, j))
        dims = ("parallel", "parallel")
        footprint = 2 * itemsize * (tile_b * K + tile_n * K + tile_n + tile_b * tile_n)

    vmem_limit = int(min(vmem_cap, max(32 << 20, footprint * 3 // 2)))

    return pl.pallas_call(
        kernel,
        out_shape=jax.ShapeDtypeStruct((B, N), x.dtype),
        grid_spec=pltpu.PrefetchScalarGridSpec(
            num_scalar_prefetch=0,
            grid=grid,
            in_specs=in_specs,
            out_specs=out_specs,
        ),
        compiler_params=pltpu.CompilerParams(
            dimension_semantics=dims,
            vmem_limit_bytes=vmem_limit,
        ),
        cost_estimate=cost,
    )(x, weight, b2)


if __name__ == "__main__":
    key = jax.random.PRNGKey(0)
    kx, kw, kb, kx2, kw2, kb2 = jax.random.split(key, 6)

    def ref_fn(x, w, b):
        y = x @ w.T + b
        return jnp.where(y >= 0, y, 0.2 * y)

    # Case 1: small shapes consistent with the module: x: (batch, latent_dim).
    batch, latent_dim, hidden_dim = 8, 32, 64
    x = jax.random.normal(kx, (batch, latent_dim), dtype=jnp.float32)
    weight = jax.random.normal(kw, (hidden_dim, latent_dim), dtype=jnp.float32) * 0.1
    bias = jax.random.normal(kb, (hidden_dim,), dtype=jnp.float32) * 0.1

    out = jax.block_until_ready(projection_forward(x, weight, bias))
    assert out.shape == (batch, hidden_dim)
    assert jnp.allclose(out, ref_fn(x, weight, bias), atol=1e-5, rtol=1e-5)

    # Case 2: ragged shapes + forced batch tiling to exercise the masked edge blocks.
    batch2, latent2, hidden2 = 20, 7, 24
    x2 = jax.random.normal(kx2, (batch2, latent2), dtype=jnp.float32)
    w2 = jax.random.normal(kw2, (hidden2, latent2), dtype=jnp.float32) * 0.1
    b2 = jax.random.normal(kb2, (hidden2,), dtype=jnp.float32) * 0.1

    out2 = jax.block_until_ready(projection_forward(x2, w2, b2, tile_b=8))
    assert out2.shape == (batch2, hidden2)
    assert jnp.allclose(out2, ref_fn(x2, w2, b2), atol=1e-5, rtol=1e-5)

    print("KERNEL_OK")
</pallas_src>

<mosaic_0001>
module attributes {stable_mosaic.version = 11 : i64} {
  func.func @_projection_kernel(%arg0: i32, %arg1: memref<8x32xf32, #tpu.memory_space<vmem>>, %arg2: memref<64x32xf32, #tpu.memory_space<vmem>>, %arg3: memref<1x64xf32, #tpu.memory_space<vmem>>, %arg4: memref<8x64xf32, #tpu.memory_space<vmem>>) attributes {dimension_semantics = [#tpu.dimension_semantics<parallel>], iteration_bounds = array<i64: 1>, scalar_prefetch = 0 : i64, scratch_operands = 0 : i64, tpu.core_type = #tpu.core_type<tc>, window_params = [{transform_indices = @transform_0, window_bounds = array<i64: 8, 32>}, {pipeline_mode = #tpu.pipeline_mode<synchronous>, transform_indices = @transform_1, window_bounds = array<i64: 64, 32>}, {pipeline_mode = #tpu.pipeline_mode<synchronous>, transform_indices = @transform_2, window_bounds = array<i64: 1, 64>}, {transform_indices = @transform_3, window_bounds = array<i64: 8, 64>}]} {
    %c0 = arith.constant 0 : index
    %c0_0 = arith.constant 0 : index
    %0 = vector.load %arg1[%c0, %c0_0] : memref<8x32xf32, #tpu.memory_space<vmem>>, vector<8x32xf32>
    %c0_1 = arith.constant 0 : index
    %c0_2 = arith.constant 0 : index
    %1 = vector.load %arg2[%c0_1, %c0_2] : memref<64x32xf32, #tpu.memory_space<vmem>>, vector<64x32xf32>
    %cst = arith.constant dense<0.000000e+00> : vector<8x64xf32>
    %2 = tpu.matmul %0, %1, %cst {dimension_numbers = #tpu.dot_dimension_numbers<[1], [1], [0], [0], [0, 0, 1, 0], [], []>} : vector<8x32xf32>, vector<64x32xf32>, vector<8x64xf32> -> vector<8x64xf32>
    %c0_3 = arith.constant 0 : index
    %c0_4 = arith.constant 0 : index
    %3 = vector.load %arg3[%c0_3, %c0_4] : memref<1x64xf32, #tpu.memory_space<vmem>>, vector<1x64xf32>
    %4 = vector.broadcast %3 : vector<1x64xf32> to vector<8x64xf32>
    %5 = arith.addf %2, %4 : vector<8x64xf32>
    %cst_5 = arith.constant 2.000000e-01 : f32
    %6 = vector.broadcast %cst_5 : f32 to vector<8x64xf32>
    %7 = arith.mulf %6, %5 : vector<8x64xf32>
    %8 = arith.maximumf %5, %7 : vector<8x64xf32>
    %c0_6 = arith.constant 0 : index
    %c0_7 = arith.constant 0 : index
    %9 = vector.load %arg4[%c0_6, %c0_7] : memref<8x64xf32, #tpu.memory_space<vmem>>, vector<8x64xf32>
    tpu.vector_store %arg4[%c0_6, %c0_7], %8 {strides = array<i32>} : memref<8x64xf32, #tpu.memory_space<vmem>>, vector<8x64xf32>,
    return
  }
  func.func @transform_0(%arg0: i32) -> (i32, i32) {
    %c0_i32 = arith.constant 0 : i32
    %c0_i32_0 = arith.constant 0 : i32
    return %arg0, %c0_i32 : i32, i32
  }
  func.func @transform_1(%arg0: i32) -> (i32, i32) {
    %c0_i32 = arith.constant 0 : i32
    %c0_i32_0 = arith.constant 0 : i32
    %c0_i32_1 = arith.constant 0 : i32
    return %c0_i32, %c0_i32_0 : i32, i32
  }
  func.func @transform_2(%arg0: i32) -> (i32, i32) {
    %c0_i32 = arith.constant 0 : i32
    %c0_i32_0 = arith.constant 0 : i32
    %c0_i32_1 = arith.constant 0 : i32
    return %c0_i32, %c0_i32_0 : i32, i32
  }
  func.func @transform_3(%arg0: i32) -> (i32, i32) {
    %c0_i32 = arith.constant 0 : i32
    %c0_i32_0 = arith.constant 0 : i32
    return %arg0, %c0_i32 : i32, i32
  }
}

</mosaic_0001>

<bundles_post_ra>
// kernel: tpu_custom_call.1
= control target key start
LH: loop header
LB: loop body
LE: loop exit
PB: predicated region body
PF: predicated region fallthrough
CT: control target
= control target key end

     0   :  { %vm31_vm0 = vcmask 261120   ;;  %v229_v2 = vmov 0.0|0.0   ;;  %vm230_vm2 = vmmov 0   ;;  %v231_v5 = vmov 0.0   ;;  %s310_s0 = inlined_call_operand.vmem [shape: f32[8,32], index: 0, kind: input, shape index: {}]   ;;  %s311_s1 = inlined_call_operand.vmem [shape: f32[64,32], index: 1, kind: input, shape index: {}]   ;;  %s312_s2 = inlined_call_operand.vmem [shape: f32[1,64], index: 2, kind: input, shape index: {}]   ;;  %s313_s3 = inlined_call_operand.hbm [shape: f32[8,64], index: 3, kind: output, shape index: {}]  }
   0x1   :  { %v16_v0 = vld [vmem:[%s311_s1] sm:$0xff]  ;;  %v17_v1 = vld [vmem:[%s311_s1 + $0x8] sm:$0xff]  ;;  %185 = vmatprep.subr.bf16.mxu0 %v229_v2  ;;  %vm261_vm1 = vmpackc.low %vm31_vm0, %vm31_vm0  ;;  %182 = vmatprep.mubr.msk.f32.mxu0 %vm230_vm2, %v231_v5 }
   0x2   :  { %v186_v3 = vpack.c.bf16 %v17_v1, %v16_v0 }
   0x4   :  { %188 = vmatpush3.bf16.xpose.msk.msra.mxu0 %vm261_vm1, %v186_v3 }
   0x5   :  { %8 = vsyncpa [#allocation3], 0  ;;  %189 = vmatprep.subr.bf16.mxu0 %v229_v2  ;;  %v18_v6 = vld [vmem:[%s311_s1 + $0x10] sm:$0xff]  ;;  %v19_v7 = vld [vmem:[%s311_s1 + $0x18] sm:$0xff]  ;;  %s232_s5 = smov [#allocation2]   ;;  %vm131_vm3 = vcmask 523264  }
   0x6   :  { %v190_v8 = vpack.c.bf16 %v19_v7, %v18_v6  ;;  %v20_v9 = vld [vmem:[%s311_s1 + $0x20] sm:$0xff]  ;;  %v21_v10 = vld [vmem:[%s311_s1 + $0x28] sm:$0xff]  ;;  %v22_v12 = vld [vmem:[%s311_s1 + $0x30] sm:$0xff]  ;;  %s139_s6 = sshll.u32 %s232_s5, 4  ;;  %s140_s6 = int_to_ptr.vmem [resolvable:$true] %s139_s6 }
   0x7   :  { %v194_v11 = vpack.c.bf16 %v21_v10, %v20_v9  ;;  %v23_v13 = vld [vmem:[%s311_s1 + $0x38] sm:$0xff]  ;;  %v15_v15 = vld [vmem:[%s310_s0] sm:$0xff]  ;;  %s205_s1 = scalar_lea.vmem %s140_s6, 128  ;;  %p210_p1 = scmp.lt.s32.totalorder %s140_s6, %s140_s6 }
   0x8   :  { %v198_v14 = vpack.c.bf16 %v23_v13, %v22_v12  ;;  %v147_v16 = vld [vmem:[%s312_s2] ss:$0 sm:$0xff]  ;;  %p206_p0 = scmp.ne.s32.totalorder %s140_s6, %s205_s1  ;;  %p211_p2 = scmp.lt.s32.totalorder %s205_s1, %s205_s1 }
   0xa   :  { %p212_p3 = por %p211_p2, %p210_p1 }
   0xc   :  { %192 = vmatpush3.bf16.xpose.msk.msra.mxu0 %vm261_vm1, %v190_v8  ;;  %p213_p4 = pnand %p212_p3, %p206_p0 }
   0xd   :  { %193 = vmatprep.subr.bf16.mxu0 %v229_v2 }
  0x14   :  { %196 = vmatpush3.bf16.xpose.msk.msra.mxu0 %vm261_vm1, %v194_v11 }
  0x15   :  { %197 = vmatprep.subr.bf16.mxu0 %v229_v2 }
  0x1c   :  { %200 = vmatpush3.bf16.xpose.msk.msra.mxu0 %vm261_vm1, %v198_v14 }
  0x23   :  { %183 = vmatmul.mubr.msk.f32.vlgmr.msra.gmra.mrb[0].mxu0 %vm31_vm0, %v15_v15 }
  0xf6   :  { %v125_v17 = vpop.f32.mrb[0].mxu0 }
  0xf7   :  { %v126_v18 = vadd.f32 %v147_v16, %v125_v17  ;;  %v184_v19 = vpop.f32.mrb[1].mxu0 }
  0xf9   :  { %v129_v20 = vmul.f32 0.2, %v126_v18 }
  0xfb   :  { %v130_v21 = vmax.f32 %v126_v18, %v129_v20 }
  0xfd   :  { %132 = vst.msk [vmem:[#allocation2] sm:$0xff] %vm131_vm3, %v130_v21 }
  0xfe   :  { %216 = shalt.err (!%p213_p4)
}
  0xff   :  { %s217_s2 = scalar_lea.hbm %s313_s3, 128 }
 0x100   :  { %p218_p5 = scmp.ne.s32.totalorder %s313_s3, %s217_s2  ;;  %p221_p6 = scmp.lt.u32.totalorder %s217_s2, %s313_s3 }
 0x102   :  { %p223_p7 = pnand %p221_p6, %p218_p5 }
 0x104   :  { %226 = shalt.err (!%p223_p7)
}
 0x105   :  { %142 = dma.vmem_to_hbm [thread:$0]  %s140_s6, 128, %s313_s3, [#allocation3]  }
 0x106   :  { %227 = dma.done.wait [#allocation3], 128  }
 0x107   :  { %228 = vsyncadd [#allocation3], 4294967168 }
 0x108   :  { %146 = vsyncpa [#allocation3], 1 }

</bundles_post_ra>
